<compile_context>
chip_gen: v6e
topology: v6e:2x2x1
jax: 0.10.0
libtpu: 0.0.40
codegen_flags: <defaults>
</compile_context>

<pallas_src>
import functools

import jax
import jax.numpy as jnp
from jax import lax
from jax.experimental import pallas as pl
from jax.experimental.pallas import tpu as pltpu


def _round_up(x, m):
    return ((x + m - 1) // m) * m


def _tensorcores_per_chip():
    """1 for v5e/v6e, 2 for v7x (heuristic on device_kind; safe fallback 1)."""
    try:
        kind = jax.devices()[0].device_kind.lower()
    except Exception:
        return 1
    return 2 if "v7" in kind else 1


def _choose_tiling(m, max_tile, num_cores):
    """Pick (row_tile, padded_M).

    Priority: (1) minimize padded rows, (2) on 2-TC chips prefer a step count
    divisible by the core count, (3) maximize tile size to amortize the
    ~0.35 us/grid-step pipeline overhead.  Tiles > 128 are multiples of 128 so
    the in-kernel 128-row chunk loop divides them evenly.
    """
    m8 = _round_up(m, 8)
    if m8 <= 128:
        t = m8
        # Split only on 2-TC chips, and only when it adds no padded rows.
        if num_cores >= 2 and m8 >= 16 and (m8 // 2) % 8 == 0:
            t = m8 // 2
        return t, _round_up(m, t)

    cap = max(128, (min(max_tile, m8) // 128) * 128)
    best_key, best_t, best_pad_m = None, None, None
    t = 128
    while t <= cap:
        m_pad = _round_up(m, t)
        steps = m_pad // t
        pad = m_pad - m
        uneven = 0 if (num_cores < 2 or steps % num_cores == 0) else 1
        key = (pad, uneven, -t)
        if best_key is None or key < best_key:
            best_key, best_t, best_pad_m = key, t, m_pad
        t += 128
    return best_t, best_pad_m


def _mlp_kernel(x_ref, w1_ref, b1_ref, w2_ref, b2_ref, w3_ref, b3_ref, o_ref,
                *, row_chunk):
    matmul_dtype = w1_ref.dtype
    n_chunks = x_ref.shape[0] // row_chunk  # static

    # Hoist bias loads out of the unrolled row-chunk loop (JAX does not CSE
    # the re-emitted loads/broadcasts inside an unrolled loop body).
    b1 = b1_ref[...]
    b2 = b2_ref[...]
    b3 = b3_ref[...]

    def body(c, carry):
        r = pl.multiple_of(c * row_chunk, row_chunk)
        x = x_ref[pl.ds(r, row_chunk), :].astype(matmul_dtype)

        # fc1: tanh(x @ W1 + b1) -- f32 MXU accumulation, bias/tanh in f32,
        # then keep only the bf16 copy live (halves activation spill traffic).
        h1 = jnp.tanh(
            jnp.dot(x, w1_ref[...], preferred_element_type=jnp.float32) + b1
        ).astype(matmul_dtype)
        # TODO(synk): noise=True branch (concat of torch.randn(..., 64)) not
        #             implemented; default module config noise=False is
        #             reproduced exactly.

        # fc2: tanh(h1 @ W2 + b2)
        h2 = jnp.tanh(
            jnp.dot(h1, w2_ref[...], preferred_element_type=jnp.float32) + b2
        ).astype(matmul_dtype)

        # fc3: h2 @ W3 + b3 (no activation); stored at real (unpadded) width.
        out = jnp.dot(h2, w3_ref[...], preferred_element_type=jnp.float32) + b3
        o_ref[pl.ds(r, row_chunk), :] = out.astype(o_ref.dtype)
        return carry

    lax.fori_loop(0, n_chunks, body, 0, unroll=True)


@functools.partial(jax.jit, static_argnames=("tile_m",))
def mlp_forward(obs, params, tile_m=1024):
    """obs: (B, A, F) float32.  params: weights already in their compute dtype
    (use prepare_params for the bf16 fast path).  Returns (B, A, out)."""
    w1, b1, w2, b2, w3, b3 = params
    B, A, F = obs.shape
    out_features = w3.shape[1]

    M = B * A
    x2d = obs.reshape(M, F)

    num_cores = _tensorcores_per_chip()
    tile_rows, M_pad = _choose_tiling(M, tile_m, num_cores)
    if M_pad != M:  # only pad rows when actually needed
        x2d = jnp.pad(x2d, ((0, M_pad - M), (0, 0)))
    row_chunk = min(tile_rows, 128)
    grid = (M_pad // tile_rows,)

    kernel = functools.partial(_mlp_kernel, row_chunk=row_chunk)

    out = pl.pallas_call(
        kernel,
        out_shape=jax.ShapeDtypeStruct((M_pad, out_features), obs.dtype),
        grid_spec=pltpu.PrefetchScalarGridSpec(
            num_scalar_prefetch=0,
            grid=grid,
            in_specs=[
                # activations: tiled over rows
                pl.BlockSpec((tile_rows, F), lambda i: (i, 0)),
                # weights / biases: full arrays, constant index_map (no re-DMA)
                pl.BlockSpec(w1.shape, lambda i: (0, 0)),
                pl.BlockSpec(b1.shape, lambda i: (0, 0)),
                pl.BlockSpec(w2.shape, lambda i: (0, 0)),
                pl.BlockSpec(b2.shape, lambda i: (0, 0)),
                pl.BlockSpec(w3.shape, lambda i: (0, 0)),
                pl.BlockSpec(b3.shape, lambda i: (0, 0)),
            ],
            # block last dim == full array last dim -> legal narrow block;
            # output bytes are only the real out_features columns.
            out_specs=pl.BlockSpec((tile_rows, out_features), lambda i: (i, 0)),
        ),
        compiler_params=pltpu.CompilerParams(
            dimension_semantics=("parallel",),
        ),
    )(x2d, w1, b1, w2, b2, w3, b3)

    if M_pad != M:
        out = out[:M]
    return out.reshape(B, A, out_features)


def prepare_params(params, matmul_dtype=jnp.bfloat16):
    """Cast weights once, outside the jitted forward (bf16 MXU fast path).
    Biases stay f32: bias-add and tanh are performed in f32."""
    w1, b1, w2, b2, w3, b3 = params
    return (w1.astype(matmul_dtype), b1,
            w2.astype(matmul_dtype), b2,
            w3.astype(matmul_dtype), b3)


def init_params(key, in_features, out_features):
    """Deterministic nn.Linear-style init (uniform +-1/sqrt(fan_in))."""
    def linear(key, fan_in, fan_out):
        kw, kb = jax.random.split(key)
        bound = 1.0 / jnp.sqrt(fan_in)
        w = jax.random.uniform(kw, (fan_in, fan_out), jnp.float32, -bound, bound)
        b = jax.random.uniform(kb, (1, fan_out), jnp.float32, -bound, bound)
        return w, b

    k1, k2, k3 = jax.random.split(key, 3)
    w1, b1 = linear(k1, in_features, 512)
    w2, b2 = linear(k2, 512, 256)
    w3, b3 = linear(k3, 256, out_features)
    return (w1, b1, w2, b2, w3, b3)


def mlp_reference(obs, params):
    w1, b1, w2, b2, w3, b3 = params
    x = jnp.tanh(obs @ w1 + b1[0])
    x = jnp.tanh(x @ w2 + b2[0])
    return x @ w3 + b3[0]


if __name__ == "__main__":
    key = jax.random.PRNGKey(0)
    k_obs, k_params, k_obs2 = jax.random.split(key, 3)

    in_features, out_features = 32, 8
    params = init_params(k_params, in_features, out_features)
    params_bf16 = prepare_params(params, jnp.bfloat16)  # cast once, outside jit
    state = []  # forward() returns (x, state); state passes through untouched

    # Case 1: tiny module-spec shape (row padding + small-tile path).
    obs_small = jax.random.normal(k_obs, (2, 3, in_features), jnp.float32)
    # Case 2: larger batch (multi-chunk tiles, zero-pad tiling, narrow output).
    obs_big = jax.random.normal(k_obs2, (96, 4, in_features), jnp.float32)

    for name, obs in (("small", obs_small), ("big", obs_big)):
        ref = mlp_reference(obs, params)

        # f32 path (closest to PyTorch f32 semantics; MXU-decomposed, not
        # bit-exact).
        out_f32 = jax.block_until_ready(mlp_forward(obs, params))
        assert out_f32.shape == ref.shape
        assert jnp.allclose(out_f32, ref, atol=2e-5, rtol=2e-5), \
            f"{name}: f32 mismatch vs reference"

        # Fast path: bf16 weights/activations on the MXU, f32 accumulation.
        out_bf16 = jax.block_until_ready(mlp_forward(obs, params_bf16))
        assert out_bf16.shape == ref.shape
        assert jnp.allclose(out_bf16, ref, atol=5e-2, rtol=5e-2), \
            f"{name}: bf16-matmul mismatch vs reference"

    out, out_state = out_bf16, state
    print("KERNEL_OK")
</pallas_src>

<mosaic_0001>
module attributes {stable_mosaic.version = 11 : i64} {
  func.func @_mlp_kernel(%arg0: i32, %arg1: memref<8x32xf32, #tpu.memory_space<vmem>>, %arg2: memref<32x512xf32, #tpu.memory_space<vmem>>, %arg3: memref<1x512xf32, #tpu.memory_space<vmem>>, %arg4: memref<512x256xf32, #tpu.memory_space<vmem>>, %arg5: memref<1x256xf32, #tpu.memory_space<vmem>>, %arg6: memref<256x8xf32, #tpu.memory_space<vmem>>, %arg7: memref<1x8xf32, #tpu.memory_space<vmem>>, %arg8: memref<8x8xf32, #tpu.memory_space<vmem>>) attributes {dimension_semantics = [#tpu.dimension_semantics<parallel>], iteration_bounds = array<i64: 1>, scalar_prefetch = 0 : i64, scratch_operands = 0 : i64, tpu.core_type = #tpu.core_type<tc>, window_params = [{transform_indices = @transform_0, window_bounds = array<i64: 8, 32>}, {pipeline_mode = #tpu.pipeline_mode<synchronous>, transform_indices = @transform_1, window_bounds = array<i64: 32, 512>}, {pipeline_mode = #tpu.pipeline_mode<synchronous>, transform_indices = @transform_2, window_bounds = array<i64: 1, 512>}, {pipeline_mode = #tpu.pipeline_mode<synchronous>, transform_indices = @transform_3, window_bounds = array<i64: 512, 256>}, {pipeline_mode = #tpu.pipeline_mode<synchronous>, transform_indices = @transform_4, window_bounds = array<i64: 1, 256>}, {pipeline_mode = #tpu.pipeline_mode<synchronous>, transform_indices = @transform_5, window_bounds = array<i64: 256, 8>}, {pipeline_mode = #tpu.pipeline_mode<synchronous>, transform_indices = @transform_6, window_bounds = array<i64: 1, 8>}, {transform_indices = @transform_7, window_bounds = array<i64: 8, 8>}]} {
    %c0 = arith.constant 0 : index
    %c0_0 = arith.constant 0 : index
    %0 = vector.load %arg3[%c0, %c0_0] : memref<1x512xf32, #tpu.memory_space<vmem>>, vector<1x512xf32>
    %c0_1 = arith.constant 0 : index
    %c0_2 = arith.constant 0 : index
    %1 = vector.load %arg5[%c0_1, %c0_2] : memref<1x256xf32, #tpu.memory_space<vmem>>, vector<1x256xf32>
    %c0_3 = arith.constant 0 : index
    %c0_4 = arith.constant 0 : index
    %2 = vector.load %arg7[%c0_3, %c0_4] : memref<1x8xf32, #tpu.memory_space<vmem>>, vector<1x8xf32>
    %c0_i32 = arith.constant 0 : i32
    %c8_i32 = arith.constant 8 : i32
    %3 = arith.muli %c0_i32, %c8_i32 : i32
    %4 = tpu.assume_multiple %3, 8 : i32
    %5 = arith.index_cast %4 : i32 to index
    %c0_5 = arith.constant 0 : index
    %6 = vector.load %arg1[%5, %c0_5] : memref<8x32xf32, #tpu.memory_space<vmem>>, vector<8x32xf32>
    %c0_6 = arith.constant 0 : index
    %c0_7 = arith.constant 0 : index
    %7 = vector.load %arg2[%c0_6, %c0_7] : memref<32x512xf32, #tpu.memory_space<vmem>>, vector<32x512xf32>
    %cst = arith.constant dense<0.000000e+00> : vector<8x512xf32>
    %8 = tpu.matmul %6, %7, %cst {dimension_numbers = #tpu.dot_dimension_numbers<[1], [0], [0], [1], [0, 0, 1, 1], [], []>} : vector<8x32xf32>, vector<32x512xf32>, vector<8x512xf32> -> vector<8x512xf32>
    %9 = vector.broadcast %0 : vector<1x512xf32> to vector<8x512xf32>
    %10 = arith.addf %8, %9 : vector<8x512xf32>
    %11 = math.tanh %10 : vector<8x512xf32>
    %c0_8 = arith.constant 0 : index
    %c0_9 = arith.constant 0 : index
    %12 = vector.load %arg4[%c0_8, %c0_9] : memref<512x256xf32, #tpu.memory_space<vmem>>, vector<512x256xf32>
    %cst_10 = arith.constant dense<0.000000e+00> : vector<8x256xf32>
    %13 = tpu.matmul %11, %12, %cst_10 {dimension_numbers = #tpu.dot_dimension_numbers<[1], [0], [0], [1], [0, 0, 1, 1], [], []>} : vector<8x512xf32>, vector<512x256xf32>, vector<8x256xf32> -> vector<8x256xf32>
    %14 = vector.broadcast %1 : vector<1x256xf32> to vector<8x256xf32>
    %15 = arith.addf %13, %14 : vector<8x256xf32>
    %16 = math.tanh %15 : vector<8x256xf32>
    %c0_11 = arith.constant 0 : index
    %c0_12 = arith.constant 0 : index
    %17 = vector.load %arg6[%c0_11, %c0_12] : memref<256x8xf32, #tpu.memory_space<vmem>>, vector<256x8xf32>
    %cst_13 = arith.constant dense<0.000000e+00> : vector<8x8xf32>
    %18 = tpu.matmul %16, %17, %cst_13 {dimension_numbers = #tpu.dot_dimension_numbers<[1], [0], [0], [1], [0, 0, 1, 1], [], []>} : vector<8x256xf32>, vector<256x8xf32>, vector<8x8xf32> -> vector<8x8xf32>
    %19 = vector.broadcast %2 : vector<1x8xf32> to vector<8x8xf32>
    %20 = arith.addf %18, %19 : vector<8x8xf32>
    %21 = arith.index_cast %4 : i32 to index
    %c0_14 = arith.constant 0 : index
    %22 = vector.load %arg8[%21, %c0_14] : memref<8x8xf32, #tpu.memory_space<vmem>>, vector<8x8xf32>
    tpu.vector_store %arg8[%21, %c0_14], %20 {strides = array<i32>} : memref<8x8xf32, #tpu.memory_space<vmem>>, vector<8x8xf32>,
    %c1_i32 = arith.constant 1 : i32
    return
  }
  func.func @transform_0(%arg0: i32) -> (i32, i32) {
    %c0_i32 = arith.constant 0 : i32
    %c0_i32_0 = arith.constant 0 : i32
    return %arg0, %c0_i32 : i32, i32
  }
  func.func @transform_1(%arg0: i32) -> (i32, i32) {
    %c0_i32 = arith.constant 0 : i32
    %c0_i32_0 = arith.constant 0 : i32
    %c0_i32_1 = arith.constant 0 : i32
    return %c0_i32, %c0_i32_0 : i32, i32
  }
  func.func @transform_2(%arg0: i32) -> (i32, i32) {
    %c0_i32 = arith.constant 0 : i32
    %c0_i32_0 = arith.constant 0 : i32
    %c0_i32_1 = arith.constant 0 : i32
    return %c0_i32, %c0_i32_0 : i32, i32
  }
  func.func @transform_3(%arg0: i32) -> (i32, i32) {
    %c0_i32 = arith.constant 0 : i32
    %c0_i32_0 = arith.constant 0 : i32
    %c0_i32_1 = arith.constant 0 : i32
    return %c0_i32, %c0_i32_0 : i32, i32
  }
  func.func @transform_4(%arg0: i32) -> (i32, i32) {
    %c0_i32 = arith.constant 0 : i32
    %c0_i32_0 = arith.constant 0 : i32
    %c0_i32_1 = arith.constant 0 : i32
    return %c0_i32, %c0_i32_0 : i32, i32
  }
  func.func @transform_5(%arg0: i32) -> (i32, i32) {
    %c0_i32 = arith.constant 0 : i32
    %c0_i32_0 = arith.constant 0 : i32
    %c0_i32_1 = arith.constant 0 : i32
    return %c0_i32, %c0_i32_0 : i32, i32
  }
  func.func @transform_6(%arg0: i32) -> (i32, i32) {
    %c0_i32 = arith.constant 0 : i32
    %c0_i32_0 = arith.constant 0 : i32
    %c0_i32_1 = arith.constant 0 : i32
    return %c0_i32, %c0_i32_0 : i32, i32
  }
  func.func @transform_7(%arg0: i32) -> (i32, i32) {
    %c0_i32 = arith.constant 0 : i32
    %c0_i32_0 = arith.constant 0 : i32
    return %arg0, %c0_i32 : i32, i32
  }
}

</mosaic_0001>

<bundles_post_ra>
// kernel: mlp_forward.1
= control target key start
LH: loop header
LB: loop body
LE: loop exit
PB: predicated region body
PF: predicated region fallthrough
CT: control target
= control target key end

     0   :  { %12 = vsyncpa [#allocation3], 0  ;;  %s705_s24 = smov [#allocation2]   ;;  %s927_s0 = inlined_call_operand.vmem [shape: f32[8,32], index: 0, kind: input, shape index: {}]   ;;  %s928_s1 = inlined_call_operand.vmem [shape: f32[32,512], index: 1, kind: input, shape index: {}]   ;;  %s929_s2 = inlined_call_operand.vmem [shape: f32[1,512], index: 2, kind: input, shape index: {}]   ;;  %s930_s3 = inlined_call_operand.hbm [shape: f32[512,256], index: 3, kind: input, shape index: {}]   ;;  %s931_s4 = inlined_call_operand.vmem [shape: f32[1,256], index: 4, kind: input, shape index: {}]   ;;  %s932_s5 = inlined_call_operand.vmem [shape: f32[256,8], index: 5, kind: input, shape index: {}]   ;;  %s933_s6 = inlined_call_operand.vmem [shape: f32[1,8], index: 6, kind: input, shape index: {}]   ;;  %s934_s7 = inlined_call_operand.vmem [shape: f32[8,8], index: 7, kind: output, shape index: {}]  }
   0x1   :  { %s24_s25 = sshll.u32 %s705_s24, 4  ;;  %s25_s25 = int_to_ptr.vmem [resolvable:$true] %s24_s25 }
   0x2   :  { %s691_s26 = scalar_lea.vmem %s25_s25, 16384  ;;  %p696_p1 = scmp.lt.s32.totalorder %s25_s25, %s25_s25 }
   0x3   :  { %p692_p0 = scmp.ne.s32.totalorder %s25_s25, %s691_s26  ;;  %p697_p2 = scmp.lt.s32.totalorder %s691_s26, %s691_s26 }
   0x5   :  { %p698_p3 = por %p697_p2, %p696_p1 }
   0x7   :  { %p699_p4 = pnand %p698_p3, %p692_p0 }
   0x9   :  { %702 = shalt.err (!%p699_p4)
}
   0xa   :  { %s706_s27 = smov 256   ;;  %s707_s28 = smov 16  }
   0xb   :  { %30 = dma.hbm_to_vmem [thread:$0]  %s930_s3, 16384, %s25_s25, [#allocation3], %s706_s27, %s706_s27, %s707_s28  }
   0xc   :  { %703 = dma.done.wait [#allocation3], 16384  }
   0xd   :  { %704 = vsyncadd [#allocation3], 4294950912  ;;  %v708_v0 = vmov 0.0   ;;  %v57_v1 = vld [vmem:[%s928_s1 + $0x68] sm:$0xff]  ;;  %v56_v2 = vld [vmem:[%s928_s1 + $0x60] sm:$0xff]  ;;  %vm81_vm0 = vcmask 261120  }
   0xe   :  { %149 = vmatprep.mubr.f32.mxu1 %v708_v0  ;;  %v53_v3 = vld [vmem:[%s928_s1 + $0x48] sm:$0xff]  ;;  %109 = vmatprep.subr.mxu1 %v57_v1  ;;  %v52_v4 = vld [vmem:[%s928_s1 + $0x40] sm:$0xff]  ;;  %v262_v10 = vld [vmem:[#allocation2 + $0xf8] sm:$0xff]  ;;  %vm622_vm1 = vcmask 64512  }
   0xf   :  { %110 = vmatpush1.msra.mxu1 %v56_v2  ;;  %v49_v5 = vld [vmem:[%s928_s1 + $0x28] sm:$0xff]  ;;  %v48_v6 = vld [vmem:[%s928_s1 + $0x20] sm:$0xff]  ;;  %v59_v11 = vld [vmem:[%s928_s1 + $0x78] sm:$0xff]  ;;  %370 = vmatprep.subr.mxu0 %v262_v10 }
  0x10   :  { %111 = vmatprep.subr.mxu1 %v53_v3  ;;  %v45_v7 = vld [vmem:[%s928_s1 + $0x8] sm:$0xff]  ;;  %v44_v8 = vld [vmem:[%s928_s1] sm:$0xff]  ;;  %v261_v12 = vld [vmem:[#allocation2 + $0xf0] sm:$0xff] }
  0x11   :  { %112 = vmatpush1.msra.mxu1 %v52_v4  ;;  %v43_v9 = vld [vmem:[%s927_s0] sm:$0xff]  ;;  %v260_v13 = vld [vmem:[#allocation2 + $0xe8] sm:$0xff]  ;;  %v58_v14 = vld [vmem:[%s928_s1 + $0x70] sm:$0xff]  ;;  %371 = vmatpush1.msra.mxu0 %v261_v12 }
  0x12   :  { %113 = vmatprep.subr.mxu1 %v49_v5  ;;  %v55_v15 = vld [vmem:[%s928_s1 + $0x58] sm:$0xff]  ;;  %372 = vmatprep.subr.mxu0 %v260_v13  ;;  %v259_v16 = vld [vmem:[#allocation2 + $0xe0] sm:$0xff]  ;;  %v54_v17 = vld [vmem:[%s928_s1 + $0x50] sm:$0xff] }
  0x13   :  { %114 = vmatpush1.msra.mxu1 %v48_v6  ;;  %v258_v18 = vld [vmem:[#allocation2 + $0xd8] sm:$0xff]  ;;  %v257_v20 = vld [vmem:[#allocation2 + $0xd0] sm:$0xff]  ;;  %373 = vmatpush1.msra.mxu0 %v259_v16  ;;  %v256_v22 = vld [vmem:[#allocation2 + $0xc8] sm:$0xff] }
  0x14   :  { %115 = vmatprep.subr.mxu1 %v45_v7  ;;  %v51_v19 = vld [vmem:[%s928_s1 + $0x38] sm:$0xff]  ;;  %v50_v21 = vld [vmem:[%s928_s1 + $0x30] sm:$0xff]  ;;  %374 = vmatprep.subr.mxu0 %v258_v18  ;;  %v255_v24 = vld [vmem:[#allocation2 + $0xc0] sm:$0xff] }
  0x15   :  { %116 = vmatpush1.msra.mxu1 %v44_v8  ;;  %v47_v23 = vld [vmem:[%s928_s1 + $0x18] sm:$0xff]  ;;  %v46_v25 = vld [vmem:[%s928_s1 + $0x10] sm:$0xff]  ;;  %375 = vmatpush1.msra.mxu0 %v257_v20  ;;  %v252_v30 = vld [vmem:[#allocation2 + $0xa8] sm:$0xff] }
  0x16   :  { %629 = vmatmul.mubr.msk.f32.vlgmr.msra.gmra.mxu1 %vm81_vm0, %v43_v9  ;;  %180 = vmatprep.subr.mxu1 %v59_v11  ;;  %v254_v26 = vld [vmem:[#allocation2 + $0xb8] sm:$0xff]  ;;  %v253_v28 = vld [vmem:[#allocation2 + $0xb0] sm:$0xff]  ;;  %v324_v31 = vld [vmem:[#allocation2 + $0x2e8] sm:$0xff] }
  0x17   :  { %181 = vmatpush1.msra.mxu1 %v58_v14  ;;  %220 = vmatprep.mubr.f32.mxu1 %v708_v0  ;;  %v326_v27 = vld [vmem:[#allocation2 + $0x2f8] sm:$0xff]  ;;  %v325_v29 = vld [vmem:[#allocation2 + $0x2f0] sm:$0xff]  ;;  %v251_v32 = vld [vmem:[#allocation2 + $0xa0] sm:$0xff] }
  0x18   :  { %182 = vmatprep.subr.mxu1 %v55_v15  ;;  %376 = vmatprep.subr.mxu0 %v256_v22  ;;  %v323_v33 = vld [vmem:[#allocation2 + $0x2e0] sm:$0xff]  ;;  %v250_v34 = vld [vmem:[#allocation2 + $0x98] sm:$0xff]  ;;  %v249_v36 = vld [vmem:[#allocation2 + $0x90] sm:$0xff] }
  0x19   :  { %183 = vmatpush1.msra.mxu1 %v54_v17  ;;  %377 = vmatpush1.msra.mxu0 %v255_v24  ;;  %v322_v35 = vld [vmem:[#allocation2 + $0x2d8] sm:$0xff]  ;;  %v321_v37 = vld [vmem:[#allocation2 + $0x2d0] sm:$0xff]  ;;  %v248_v38 = vld [vmem:[#allocation2 + $0x88] sm:$0xff] }
  0x1a   :  { %184 = vmatprep.subr.mxu1 %v51_v19  ;;  %378 = vmatprep.subr.mxu0 %v254_v26  ;;  %v320_v39 = vld [vmem:[#allocation2 + $0x2c8] sm:$0xff]  ;;  %v247_v40 = vld [vmem:[#allocation2 + $0x80] sm:$0xff]  ;;  %v246_v42 = vld [vmem:[#allocation2 + $0x78] sm:$0xff] }
  0x1b   :  { %185 = vmatpush1.msra.mxu1 %v50_v21  ;;  %379 = vmatpush1.msra.mxu0 %v253_v28  ;;  %v319_v41 = vld [vmem:[#allocation2 + $0x2c0] sm:$0xff]  ;;  %v318_v43 = vld [vmem:[#allocation2 + $0x2b8] sm:$0xff]  ;;  %v245_v44 = vld [vmem:[#allocation2 + $0x70] sm:$0xff] }
  0x1c   :  { %186 = vmatprep.subr.mxu1 %v47_v23  ;;  %380 = vmatprep.subr.mxu0 %v252_v30  ;;  %v317_v45 = vld [vmem:[#allocation2 + $0x2b0] sm:$0xff]  ;;  %v244_v46 = vld [vmem:[#allocation2 + $0x68] sm:$0xff]  ;;  %v243_v48 = vld [vmem:[#allocation2 + $0x60] sm:$0xff] }
  0x1d   :  { %187 = vmatpush1.msra.mxu1 %v46_v25  ;;  %381 = vmatpush1.msra.mxu0 %v251_v32  ;;  %v316_v47 = vld [vmem:[#allocation2 + $0x2a8] sm:$0xff]  ;;  %v315_v49 = vld [vmem:[#allocation2 + $0x2a0] sm:$0xff]  ;;  %v242_v50 = vld [vmem:[#allocation2 + $0x58] sm:$0xff] }
  0x1e   :  { %630 = vmatmul.mubr.msk.f32.vlgmr.msra.gmra.mxu1 %vm81_vm0, %v43_v9  ;;  %441 = vmatprep.subr.mxu1 %v326_v27  ;;  %v314_v51 = vld [vmem:[#allocation2 + $0x298] sm:$0xff]  ;;  %v241_v52 = vld [vmem:[#allocation2 + $0x50] sm:$0xff]  ;;  %v240_v54 = vld [vmem:[#allocation2 + $0x48] sm:$0xff] }
  0x1f   :  { %442 = vmatpush1.msra.mxu1 %v325_v29  ;;  %382 = vmatprep.subr.mxu0 %v250_v34  ;;  %v313_v53 = vld [vmem:[#allocation2 + $0x290] sm:$0xff]  ;;  %v312_v55 = vld [vmem:[#allocation2 + $0x288] sm:$0xff]  ;;  %v239_v56 = vld [vmem:[#allocation2 + $0x40] sm:$0xff] }
  0x20   :  { %443 = vmatprep.subr.mxu1 %v324_v31  ;;  %383 = vmatpush1.msra.mxu0 %v249_v36  ;;  %v311_v57 = vld [vmem:[#allocation2 + $0x280] sm:$0xff]  ;;  %v238_v58 = vld [vmem:[#allocation2 + $0x38] sm:$0xff]  ;;  %v237_v60 = vld [vmem:[#allocation2 + $0x30] sm:$0xff] }
  0x21   :  { %444 = vmatpush1.msra.mxu1 %v323_v33  ;;  %384 = vmatprep.subr.mxu0 %v248_v38  ;;  %v310_v59 = vld [vmem:[#allocation2 + $0x278] sm:$0xff]  ;;  %v309_v61 = vld [vmem:[#allocation2 + $0x270] sm:$0xff]  ;;  %v236_v62 = vld [vmem:[#allocation2 + $0x28] sm:$0xff] }
  0x22   :  { %445 = vmatprep.subr.mxu1 %v322_v35  ;;  %385 = vmatpush1.msra.mxu0 %v247_v40  ;;  %v308_v63 = vld [vmem:[#allocation2 + $0x268] sm:$0xff]  ;;  %v235_v0 = vld [vmem:[#allocation2 + $0x20] sm:$0xff]  ;;  %v234_v2 = vld [vmem:[#allocation2 + $0x18] sm:$0xff] }
  0x23   :  { %446 = vmatpush1.msra.mxu1 %v321_v37  ;;  %386 = vmatprep.subr.mxu0 %v246_v42  ;;  %v307_v1 = vld [vmem:[#allocation2 + $0x260] sm:$0xff]  ;;  %v306_v3 = vld [vmem:[#allocation2 + $0x258] sm:$0xff]  ;;  %v233_v4 = vld [vmem:[#allocation2 + $0x10] sm:$0xff] }
  0x24   :  { %447 = vmatprep.subr.mxu1 %v320_v39  ;;  %387 = vmatpush1.msra.mxu0 %v245_v44  ;;  %v305_v5 = vld [vmem:[#allocation2 + $0x250] sm:$0xff]  ;;  %v232_v6 = vld [vmem:[#allocation2 + $0x8] sm:$0xff]  ;;  %v231_v8 = vld [vmem:[#allocation2] sm:$0xff] }
  0x25   :  { %448 = vmatpush1.msra.mxu1 %v319_v41  ;;  %388 = vmatprep.subr.mxu0 %v244_v46  ;;  %v304_v7 = vld [vmem:[#allocation2 + $0x248] sm:$0xff]  ;;  %v303_v9 = vld [vmem:[#allocation2 + $0x240] sm:$0xff]  ;;  %v294_v10 = vld [vmem:[#allocation2 + $0x1f8] sm:$0xff] }
  0x26   :  { %449 = vmatprep.subr.mxu1 %v318_v43  ;;  %389 = vmatpush1.msra.mxu0 %v243_v48  ;;  %v302_v11 = vld [vmem:[#allocation2 + $0x238] sm:$0xff]  ;;  %v293_v12 = vld [vmem:[#allocation2 + $0x1f0] sm:$0xff]  ;;  %v292_v14 = vld [vmem:[#allocation2 + $0x1e8] sm:$0xff] }
  0x27   :  { %450 = vmatpush1.msra.mxu1 %v317_v45  ;;  %390 = vmatprep.subr.mxu0 %v242_v50  ;;  %v301_v13 = vld [vmem:[#allocation2 + $0x230] sm:$0xff]  ;;  %v300_v15 = vld [vmem:[#allocation2 + $0x228] sm:$0xff]  ;;  %v291_v16 = vld [vmem:[#allocation2 + $0x1e0] sm:$0xff] }
  0x28   :  { %451 = vmatprep.subr.mxu1 %v316_v47  ;;  %391 = vmatpush1.msra.mxu0 %v241_v52  ;;  %v299_v17 = vld [vmem:[#allocation2 + $0x220] sm:$0xff]  ;;  %v290_v18 = vld [vmem:[#allocation2 + $0x1d8] sm:$0xff]  ;;  %v289_v20 = vld [vmem:[#allocation2 + $0x1d0] sm:$0xff] }
  0x29   :  { %452 = vmatpush1.msra.mxu1 %v315_v49  ;;  %392 = vmatprep.subr.mxu0 %v240_v54  ;;  %v298_v19 = vld [vmem:[#allocation2 + $0x218] sm:$0xff]  ;;  %v297_v21 = vld [vmem:[#allocation2 + $0x210] sm:$0xff]  ;;  %v288_v22 = vld [vmem:[#allocation2 + $0x1c8] sm:$0xff] }
  0x2a   :  { %453 = vmatprep.subr.mxu1 %v314_v51  ;;  %393 = vmatpush1.msra.mxu0 %v239_v56  ;;  %v296_v23 = vld [vmem:[#allocation2 + $0x208] sm:$0xff]  ;;  %v287_v24 = vld [vmem:[#allocation2 + $0x1c0] sm:$0xff]  ;;  %v286_v26 = vld [vmem:[#allocation2 + $0x1b8] sm:$0xff] }
  0x2b   :  { %454 = vmatpush1.msra.mxu1 %v313_v53  ;;  %394 = vmatprep.subr.mxu0 %v238_v58  ;;  %v295_v25 = vld [vmem:[#allocation2 + $0x200] sm:$0xff]  ;;  %v358_v27 = vld [vmem:[#allocation2 + $0x3f8] sm:$0xff]  ;;  %v285_v28 = vld [vmem:[#allocation2 + $0x1b0] sm:$0xff] }
  0x2c   :  { %455 = vmatprep.subr.mxu1 %v312_v55  ;;  %395 = vmatpush1.msra.mxu0 %v237_v60  ;;  %v357_v29 = vld [vmem:[#allocation2 + $0x3f0] sm:$0xff]  ;;  %v284_v30 = vld [vmem:[#allocation2 + $0x1a8] sm:$0xff]  ;;  %v283_v32 = vld [vmem:[#allocation2 + $0x1a0] sm:$0xff] }
  0x2d   :  { %456 = vmatpush1.msra.mxu1 %v311_v57  ;;  %396 = vmatprep.subr.mxu0 %v236_v62  ;;  %v356_v31 = vld [vmem:[#allocation2 + $0x3e8] sm:$0xff]  ;;  %v355_v33 = vld [vmem:[#allocation2 + $0x3e0] sm:$0xff]  ;;  %v282_v34 = vld [vmem:[#allocation2 + $0x198] sm:$0xff] }
  0x2e   :  { %457 = vmatprep.subr.mxu1 %v310_v59  ;;  %397 = vmatpush1.msra.mxu0 %v235_v0  ;;  %v354_v35 = vld [vmem:[#allocation2 + $0x3d8] sm:$0xff]  ;;  %v281_v36 = vld [vmem:[#allocation2 + $0x190] sm:$0xff]  ;;  %v280_v38 = vld [vmem:[#allocation2 + $0x188] sm:$0xff] }
  0x2f   :  { %458 = vmatpush1.msra.mxu1 %v309_v61  ;;  %398 = vmatprep.subr.mxu0 %v234_v2  ;;  %v353_v37 = vld [vmem:[#allocation2 + $0x3d0] sm:$0xff]  ;;  %v352_v39 = vld [vmem:[#allocation2 + $0x3c8] sm:$0xff]  ;;  %v279_v40 = vld [vmem:[#allocation2 + $0x180] sm:$0xff] }
  0x30   :  { %459 = vmatprep.subr.mxu1 %v308_v63  ;;  %399 = vmatpush1.msra.mxu0 %v233_v4  ;;  %v351_v41 = vld [vmem:[#allocation2 + $0x3c0] sm:$0xff]  ;;  %v278_v42 = vld [vmem:[#allocation2 + $0x178] sm:$0xff]  ;;  %v277_v44 = vld [vmem:[#allocation2 + $0x170] sm:$0xff] }
  0x31   :  { %460 = vmatpush1.msra.mxu1 %v307_v1  ;;  %400 = vmatprep.subr.mxu0 %v232_v6  ;;  %v350_v43 = vld [vmem:[#allocation2 + $0x3b8] sm:$0xff]  ;;  %v349_v45 = vld [vmem:[#allocation2 + $0x3b0] sm:$0xff]  ;;  %v276_v46 = vld [vmem:[#allocation2 + $0x168] sm:$0xff] }
  0x32   :  { %461 = vmatprep.subr.mxu1 %v306_v3  ;;  %401 = vmatpush1.msra.mxu0 %v231_v8  ;;  %v348_v47 = vld [vmem:[#allocation2 + $0x3a8] sm:$0xff]  ;;  %v275_v48 = vld [vmem:[#allocation2 + $0x160] sm:$0xff]  ;;  %v274_v50 = vld [vmem:[#allocation2 + $0x158] sm:$0xff] }
  0x33   :  { %462 = vmatpush1.msra.mxu1 %v305_v5  ;;  %402 = vmatprep.subr.mxu0 %v294_v10  ;;  %v347_v49 = vld [vmem:[#allocation2 + $0x3a0] sm:$0xff]  ;;  %v346_v51 = vld [vmem:[#allocation2 + $0x398] sm:$0xff]  ;;  %v273_v52 = vld [vmem:[#allocation2 + $0x150] sm:$0xff] }
  0x34   :  { %463 = vmatprep.subr.mxu1 %v304_v7  ;;  %403 = vmatpush2.msra.mxu0 %v293_v12  ;;  %v345_v53 = vld [vmem:[#allocation2 + $0x390] sm:$0xff]  ;;  %v272_v54 = vld [vmem:[#allocation2 + $0x148] sm:$0xff]  ;;  %v271_v56 = vld [vmem:[#allocation2 + $0x140] sm:$0xff] }
  0x35   :  { %464 = vmatpush1.msra.mxu1 %v303_v9  ;;  %404 = vmatprep.subr.mxu0 %v292_v14  ;;  %v344_v55 = vld [vmem:[#allocation2 + $0x388] sm:$0xff]  ;;  %v343_v57 = vld [vmem:[#allocation2 + $0x380] sm:$0xff]  ;;  %v270_v58 = vld [vmem:[#allocation2 + $0x138] sm:$0xff] }
  0x36   :  { %465 = vmatprep.subr.mxu1 %v302_v11  ;;  %405 = vmatpush2.msra.mxu0 %v291_v16  ;;  %v342_v59 = vld [vmem:[#allocation2 + $0x378] sm:$0xff]  ;;  %v269_v60 = vld [vmem:[#allocation2 + $0x130] sm:$0xff]  ;;  %v268_v62 = vld [vmem:[#allocation2 + $0x128] sm:$0xff] }
  0x37   :  { %466 = vmatpush1.msra.mxu1 %v301_v13  ;;  %406 = vmatprep.subr.mxu0 %v290_v18  ;;  %v341_v61 = vld [vmem:[#allocation2 + $0x370] sm:$0xff]  ;;  %v340_v63 = vld [vmem:[#allocation2 + $0x368] sm:$0xff]  ;;  %v267_v0 = vld [vmem:[#allocation2 + $0x120] sm:$0xff] }
  0x38   :  { %467 = vmatprep.subr.mxu1 %v300_v15  ;;  %407 = vmatpush2.msra.mxu0 %v289_v20  ;;  %v339_v1 = vld [vmem:[#allocation2 + $0x360] sm:$0xff]  ;;  %v266_v2 = vld [vmem:[#allocation2 + $0x118] sm:$0xff]  ;;  %v265_v4 = vld [vmem:[#allocation2 + $0x110] sm:$0xff] }
  0x39   :  { %468 = vmatpush1.msra.mxu1 %v299_v17  ;;  %408 = vmatprep.subr.mxu0 %v288_v22  ;;  %v338_v3 = vld [vmem:[#allocation2 + $0x358] sm:$0xff]  ;;  %v337_v5 = vld [vmem:[#allocation2 + $0x350] sm:$0xff]  ;;  %v264_v6 = vld [vmem:[#allocation2 + $0x108] sm:$0xff] }
  0x3a   :  { %469 = vmatprep.subr.mxu1 %v298_v19  ;;  %409 = vmatpush2.msra.mxu0 %v287_v24  ;;  %v336_v7 = vld [vmem:[#allocation2 + $0x348] sm:$0xff]  ;;  %v263_v8 = vld [vmem:[#allocation2 + $0x100] sm:$0xff]  ;;  %v334_v10 = vld [vmem:[#allocation2 + $0x338] sm:$0xff]  ;;  %v61_v19 = vlaneseq }
  0x3b   :  { %470 = vmatpush1.msra.mxu1 %v297_v21  ;;  %410 = vmatprep.subr.mxu0 %v286_v26  ;;  %v335_v9 = vld [vmem:[#allocation2 + $0x340] sm:$0xff]  ;;  %v333_v11 = vld [vmem:[#allocation2 + $0x330] sm:$0xff]  ;;  %v332_v12 = vld [vmem:[#allocation2 + $0x328] sm:$0xff] }
  0x3c   :  { %471 = vmatprep.subr.mxu1 %v296_v23  ;;  %411 = vmatpush2.msra.mxu0 %v285_v28  ;;  %v331_v13 = vld [vmem:[#allocation2 + $0x320] sm:$0xff]  ;;  %v330_v14 = vld [vmem:[#allocation2 + $0x318] sm:$0xff]  ;;  %v329_v15 = vld [vmem:[#allocation2 + $0x310] sm:$0xff]  ;;  %v808_v20 = vshrl.u32 %v61_v19, 7 }
  0x3d   :  { %472 = vmatpush1.msra.mxu1 %v295_v25  ;;  %412 = vmatprep.subr.mxu0 %v284_v30  ;;  %v328_v16 = vld [vmem:[#allocation2 + $0x308] sm:$0xff]  ;;  %v327_v17 = vld [vmem:[#allocation2 + $0x300] sm:$0xff]  ;;  %v545_v18 = vld [vmem:[%s932_s5 + $0xf8] sm:$0xff] }
  0x3e   :  { %473 = vmatprep.subr.mxu1 %v358_v27  ;;  %413 = vmatpush2.msra.mxu0 %v283_v32  ;;  %v63_v21 = vsub.s32 0, %v808_v20  ;;  %v40_v22 = vld [vmem:[%s929_s2] sm:$0xf]  ;;  %v67_v23 = vsub.s32 1, %v808_v20 }
  0x3f   :  { %474 = vmatpush2.msra.mxu1 %v357_v29  ;;  %414 = vmatprep.subr.mxu0 %v282_v34  ;;  %v71_v29 = vsub.s32 2, %v808_v20 }
  0x40   :  { %475 = vmatprep.subr.mxu1 %v356_v31  ;;  %415 = vmatpush2.msra.mxu0 %v281_v36  ;;  %v64_v24 = vrot.slane %v40_v22, %v63_v21  ;;  %v68_v25 = vrot.slane %v40_v22, %v67_v23  ;;  %v75_v31 = vsub.s32 3, %v808_v20 }
  0x41   :  { %476 = vmatpush2.msra.mxu1 %v355_v33  ;;  %416 = vmatprep.subr.mxu0 %v280_v38  ;;  %v72_v32 = vrot.slane %v40_v22, %v71_v29 }
  0x42   :  { %477 = vmatprep.subr.mxu1 %v354_v35  ;;  %417 = vmatpush2.msra.mxu0 %v279_v40  ;;  %v76_v33 = vrot.slane %v40_v22, %v75_v31 }
  0x43   :  { %478 = vmatpush2.msra.mxu1 %v353_v37  ;;  %418 = vmatprep.subr.mxu0 %v278_v42  ;;  %v528_v42 = vld [vmem:[%s932_s5 + $0x70] sm:$0xff] }
  0x44   :  { %479 = vmatprep.subr.mxu1 %v352_v39  ;;  %419 = vmatpush2.msra.mxu0 %v277_v44  ;;  %v529_v39 = vld [vmem:[%s932_s5 + $0x78] sm:$0xff] }
  0x45   :  { %480 = vmatpush2.msra.mxu1 %v351_v41  ;;  %420 = vmatprep.subr.mxu0 %v276_v46  ;;  %v544_v41 = vld [vmem:[%s932_s5 + $0xf0] sm:$0xff]  ;;  %v527_v46 = vld [vmem:[%s932_s5 + $0x68] sm:$0xff] }
  0x46   :  { %481 = vmatprep.subr.mxu1 %v350_v43  ;;  %421 = vmatpush2.msra.mxu0 %v275_v48  ;;  %v526_v48 = vld [vmem:[%s932_s5 + $0x60] sm:$0xff] }
  0x47   :  { %482 = vmatpush2.msra.mxu1 %v349_v45  ;;  %422 = vmatprep.subr.mxu0 %v274_v50  ;;  %v543_v45 = vld [vmem:[%s932_s5 + $0xe8] sm:$0xff]  ;;  %v525_v50 = vld [vmem:[%s932_s5 + $0x58] sm:$0xff] }
  0x48   :  { %483 = vmatprep.subr.mxu1 %v348_v47  ;;  %423 = vmatpush2.msra.mxu0 %v273_v52  ;;  %v542_v47 = vld [vmem:[%s932_s5 + $0xe0] sm:$0xff]  ;;  %v524_v52 = vld [vmem:[%s932_s5 + $0x50] sm:$0xff] }
  0x49   :  { %484 = vmatpush2.msra.mxu1 %v347_v49  ;;  %424 = vmatprep.subr.mxu0 %v272_v54  ;;  %v541_v49 = vld [vmem:[%s932_s5 + $0xd8] sm:$0xff]  ;;  %v523_v54 = vld [vmem:[%s932_s5 + $0x48] sm:$0xff] }
  0x4a   :  { %485 = vmatprep.subr.mxu1 %v346_v51  ;;  %425 = vmatpush2.msra.mxu0 %v271_v56  ;;  %v540_v51 = vld [vmem:[%s932_s5 + $0xd0] sm:$0xff]  ;;  %v522_v56 = vld [vmem:[%s932_s5 + $0x40] sm:$0xff] }
  0x4b   :  { %486 = vmatpush2.msra.mxu1 %v345_v53  ;;  %426 = vmatprep.subr.mxu0 %v270_v58  ;;  %v539_v53 = vld [vmem:[%s932_s5 + $0xc8] sm:$0xff]  ;;  %v521_v58 = vld [vmem:[%s932_s5 + $0x38] sm:$0xff] }
  0x4c   :  { %487 = vmatprep.subr.mxu1 %v344_v55  ;;  %427 = vmatpush2.msra.mxu0 %v269_v60  ;;  %v538_v55 = vld [vmem:[%s932_s5 + $0xc0] sm:$0xff]  ;;  %v520_v60 = vld [vmem:[%s932_s5 + $0x30] sm:$0xff] }
  0x4d   :  { %488 = vmatpush2.msra.mxu1 %v343_v57  ;;  %428 = vmatprep.subr.mxu0 %v268_v62  ;;  %v537_v57 = vld [vmem:[%s932_s5 + $0xb8] sm:$0xff]  ;;  %v519_v62 = vld [vmem:[%s932_s5 + $0x28] sm:$0xff] }
  0x4e   :  { %489 = vmatprep.subr.mxu1 %v342_v59  ;;  %429 = vmatpush2.msra.mxu0 %v267_v0  ;;  %v536_v59 = vld [vmem:[%s932_s5 + $0xb0] sm:$0xff]  ;;  %v518_v0 = vld [vmem:[%s932_s5 + $0x20] sm:$0xff] }
  0x4f   :  { %490 = vmatpush2.msra.mxu1 %v341_v61  ;;  %430 = vmatprep.subr.mxu0 %v266_v2  ;;  %v535_v61 = vld [vmem:[%s932_s5 + $0xa8] sm:$0xff]  ;;  %v517_v2 = vld [vmem:[%s932_s5 + $0x18] sm:$0xff] }
  0x50   :  { %491 = vmatprep.subr.mxu1 %v340_v63  ;;  %431 = vmatpush2.msra.mxu0 %v265_v4  ;;  %v534_v63 = vld [vmem:[%s932_s5 + $0xa0] sm:$0xff]  ;;  %v516_v4 = vld [vmem:[%s932_s5 + $0x10] sm:$0xff] }
  0x51   :  { %492 = vmatpush2.msra.mxu1 %v339_v1  ;;  %432 = vmatprep.subr.mxu0 %v264_v6  ;;  %v533_v1 = vld [vmem:[%s932_s5 + $0x98] sm:$0xff]  ;;  %v515_v6 = vld [vmem:[%s932_s5 + $0x8] sm:$0xff] }
  0x52   :  { %493 = vmatprep.subr.mxu1 %v338_v3  ;;  %433 = vmatpush2.msra.mxu0 %v263_v8  ;;  %v532_v3 = vld [vmem:[%s932_s5 + $0x90] sm:$0xff]  ;;  %v514_v8 = vld [vmem:[%s932_s5] sm:$0xff] }
  0x53   :  { %494 = vmatpush2.msra.mxu1 %v337_v5  ;;  %632 = vmatprep.subr.mxu0 %v545_v18  ;;  %v531_v5 = vld [vmem:[%s932_s5 + $0x88] sm:$0xff] }
  0x54   :  { %495 = vmatprep.subr.mxu1 %v336_v7  ;;  %v530_v7 = vld [vmem:[%s932_s5 + $0x80] sm:$0xff] }
  0x55   :  { %496 = vmatpush2.msra.mxu1 %v335_v9  ;;  %v41_v9 = vld [vmem:[%s931_s4] sm:$0x3] }
  0x56   :  { %497 = vmatprep.subr.mxu1 %v334_v10 }
  0x57   :  { %498 = vmatpush2.msra.mxu1 %v333_v11  ;;  %v363_v11 = vrot.slane %v41_v9, %v63_v21  ;;  %v631_v21 = vld [vmem:[%s933_s6] ss:$0 sm:$0xff] }
  0x58   :  { %499 = vmatprep.subr.mxu1 %v332_v12  ;;  %v367_v12 = vrot.slane %v41_v9, %v67_v23 }
  0x59   :  { %500 = vmatpush2.msra.mxu1 %v331_v13 }
  0x5a   :  { %501 = vmatprep.subr.mxu1 %v330_v14 }
  0x5b   :  { %502 = vmatpush2.msra.mxu1 %v329_v15 }
  0x5c   :  { %503 = vmatprep.subr.mxu1 %v328_v16 }
  0x5d   :  { %504 = vmatpush2.msra.mxu1 %v327_v17 }
  0xd6   :  { %v151_v26 = vpop.f32.mrf.mxu1 }
  0xd7   :  { %v152_v27 = vadd.f32 %v151_v26, %v64_v24 }
  0xd8   :  { %v153_v28 = vpop.f32.mrf.mxu1 }
  0xd9   :  { %v154_v30 = vadd.f32 %v153_v28, %v68_v25 }
  0xdb   :  { %671 = vtanh.f32 %v154_v30 }
  0xdc   :  { %673 = vtanh.f32 %v152_v27 }
  0xde   :  { %v222_v34 = vpop.f32.mrf.mxu1 }
  0xdf   :  { %v223_v35 = vadd.f32 %v222_v34, %v72_v32 }
  0xe0   :  { %v224_v36 = vpop.f32.mrf.mxu1 }
  0xe1   :  { %v225_v37 = vadd.f32 %v224_v36, %v76_v33 }
  0xe3   :  { %675 = vtanh.f32 %v225_v37 }
  0xe4   :  { %677 = vtanh.f32 %v223_v35 }
  0xe8   :  { %v672_v38 = vpop.eup %671 }
  0xe9   :  { %v674_v40 = vpop.eup %673  ;;  %434 = vmatprep.mubr.f32.mxu0 %v672_v38 }
  0xea   :  { %435 = vmatmul.mubr.f32.vlgmr.msra.gmra.mxu0 %v674_v40 }
  0xeb   :  { %633 = vmatpush3.msra.mxu0 %v529_v39 }
  0xec   :  { %634 = vmatprep.subr.mxu0 %v544_v41 }
  0xed   :  { %635 = vmatpush3.msra.mxu0 %v528_v42 }
  0xee   :  { %636 = vmatprep.subr.mxu0 %v543_v45 }
  0xef   :  { %637 = vmatpush3.msra.mxu0 %v527_v46 }
  0xf0   :  { %v676_v43 = vpop.eup %675  ;;  %638 = vmatprep.subr.mxu0 %v542_v47 }
  0xf1   :  { %v678_v44 = vpop.eup %677  ;;  %505 = vmatprep.mubr.f32.mxu1 %v676_v43  ;;  %639 = vmatpush3.msra.mxu0 %v526_v48 }
  0xf2   :  { %506 = vmatmul.mubr.f32.vlgmr.msra.gmra.mxu1 %v678_v44  ;;  %640 = vmatprep.subr.mxu0 %v541_v49 }
  0xf3   :  { %641 = vmatpush3.msra.mxu0 %v525_v50 }
  0xf4   :  { %642 = vmatprep.subr.mxu0 %v540_v51 }
  0xf5   :  { %643 = vmatpush3.msra.mxu0 %v524_v52 }
  0xf6   :  { %644 = vmatprep.subr.mxu0 %v539_v53 }
  0xf7   :  { %645 = vmatpush3.msra.mxu0 %v523_v54 }
  0xf8   :  { %646 = vmatprep.subr.mxu0 %v538_v55 }
  0xf9   :  { %647 = vmatpush3.msra.mxu0 %v522_v56 }
  0xfa   :  { %648 = vmatprep.subr.mxu0 %v537_v57 }
  0xfb   :  { %649 = vmatpush3.msra.mxu0 %v521_v58 }
  0xfc   :  { %650 = vmatprep.subr.mxu0 %v536_v59 }
  0xfd   :  { %651 = vmatpush3.msra.mxu0 %v520_v60 }
  0xfe   :  { %652 = vmatprep.subr.mxu0 %v535_v61 }
  0xff   :  { %653 = vmatpush3.msra.mxu0 %v519_v62 }
 0x100   :  { %654 = vmatprep.subr.mxu0 %v534_v63 }
 0x101   :  { %655 = vmatpush3.msra.mxu0 %v518_v0 }
 0x102   :  { %656 = vmatprep.subr.mxu0 %v533_v1 }
 0x103   :  { %657 = vmatpush3.msra.mxu0 %v517_v2 }
 0x104   :  { %658 = vmatprep.subr.mxu0 %v532_v3 }
 0x105   :  { %659 = vmatpush3.msra.mxu0 %v516_v4 }
 0x106   :  { %660 = vmatprep.subr.mxu0 %v531_v5 }
 0x107   :  { %661 = vmatpush3.msra.mxu0 %v515_v6 }
 0x108   :  { %662 = vmatprep.subr.mxu0 %v530_v7 }
 0x109   :  { %663 = vmatpush3.msra.mxu0 %v514_v8 }
 0x1aa   :  { %v436_v10 = vpop.f32.mrf.mxu0 }
 0x1ab   :  { %v437_v14 = vadd.f32 %v436_v10, %v363_v11 }
 0x1ac   :  { %v438_v13 = vpop.f32.mrf.mxu0 }
 0x1ad   :  { %v439_v16 = vadd.f32 %v438_v13, %v367_v12 }
 0x1b2   :  { %v507_v15 = vpop.f32.mrf.mxu1 }
 0x1b3   :  { %v508_v17 = vadd.f32 %v507_v15, %v437_v14 }
 0x1b4   :  { %v509_v18 = vpop.f32.mrf.mxu1 }
 0x1b5   :  { %v510_v19 = vadd.f32 %v509_v18, %v439_v16 }
 0x1b7   :  { %679 = vtanh.f32 %v510_v19 }
 0x1b8   :  { %681 = vtanh.f32 %v508_v17 }
 0x1c4   :  { %v680_v22 = vpop.eup %679 }
 0x1c5   :  { %v682_v24 = vpop.eup %681  ;;  %616 = vmatprep.mubr.f32.mxu0 %v680_v22 }
 0x1c6   :  { %617 = vmatmul.mubr.f32.vlgmr.msra.gmra.mxu0 %v682_v24 }
 0x286   :  { %v664_v25 = vpop.f32.mrf.mxu0 }
 0x288   :  { %v665_v20 = vpop.f32.mrf.mxu0 }
 0x289   :  { %v666_v23 = vadd.f32 %v665_v20, %v664_v25 }
 0x28b   :  { %v619_v26 = vadd.f32 %v666_v23, %v631_v21 }
 0x28d   :  { %623 = vst.msk [vmem:[%s934_s7] sm:$0xff] %vm622_vm1, %v619_v26 }
 0x28e   :  { %628 = vsyncpa [#allocation3], 1 }

</bundles_post_ra>
